<compile_context>
chip_gen: v6e
topology: v6e:2x2x1
jax: 0.10.0
libtpu: 0.0.40
codegen_flags: <defaults>
</compile_context>

<pallas_src>
import functools

import numpy as np
import jax
import jax.numpy as jnp
from jax.experimental import pallas as pl
from jax.experimental.pallas import tpu as pltpu


def _round_up(a, b):
    return (a + b - 1) // b * b


def _vmem_capacity_bytes():
    """Physical VMEM of the current TPU generation (fallback: v7x's 64 MiB/TC)."""
    try:
        cap = getattr(pltpu.get_tpu_info(), "vmem_capacity_bytes", None)
        if cap:
            return int(cap)
    except Exception:
        pass
    return 64 * 1024 * 1024


def _vmem_budget(vmem_cap):
    return min(int(0.70 * vmem_cap), 96 * 1024 * 1024)


def _pipeline_vmem_bytes(TM, TF, Dp, out_itemsize):
    """Rough double-buffered VMEM footprint of one pipelined grid step."""
    bf16, f32 = 2, 4
    x_blk = 2 * TM * Dp * bf16               # activations (double-buffered)
    w_blk = 2 * (Dp * TF + TF * Dp) * bf16   # W1 + W2 hidden chunks
    b_blk = 2 * (TF + Dp) * f32              # biases
    o_blk = 2 * TM * Dp * out_itemsize       # output block
    acc = TM * Dp * f32                      # accumulator scratch (single buffer)
    h_tmp = TM * TF * (f32 + bf16)           # GELU intermediate + bf16 re-cast
    return x_blk + w_blk + b_blk + o_blk + acc + h_tmp


def _choose_tf(FF, Dp, vmem_cap):
    """Hidden tile: largest of {1024,512,256,128} that divides round_up(FF,128)
    (no wasted MXU work) and still fits the budget with a modest row tile."""
    ff128 = _round_up(FF, 128)
    budget = _vmem_budget(vmem_cap)
    for tf in (1024, 512, 256, 128):
        if ff128 % tf == 0 and _pipeline_vmem_bytes(256, tf, Dp, 2) <= budget:
            return tf
    return 128


def _choose_tm(M, TF, Dp, vmem_cap, out_itemsize):
    """Row tile: as large as the VMEM budget allows (arithmetic intensity is ~TM
    flops per weight byte), capped at 512 on v7x's 64 MiB VMEM."""
    budget = _vmem_budget(vmem_cap)
    tm_cap = 512 if vmem_cap <= (64 << 20) else 1024
    TM = 128
    for cand in (1024, 768, 512, 384, 256, 128):
        if cand > tm_cap:
            continue
        if _pipeline_vmem_bytes(cand, TF, Dp, out_itemsize) <= budget:
            TM = cand
            break
    if M >= 512:
        # Keep >= 2 row tiles so the "parallel" axis shards across both v7x
        # TensorCores (megacore on v5e/v6e) without load imbalance.
        TM = min(TM, max(256, _round_up(-(-M // 2), 256)))
    elif M < TM:
        # Small batch: single tile, multiple of 16 (one bf16 vreg of sublanes).
        TM = _round_up(max(M, 1), 16)
    return TM


def prepare_mlp_params(params, *, compute_dtype=jnp.bfloat16):
    """One-time pad + cast of the MLP weights into a lane-dense, MXU-friendly layout.

    Weights are stored pre-transposed: w1 (D, FF), w2 (FF, D); biases 1-D.
    Hoisted out of mlp_forward so repeated calls pay only the kernel cost
    (and zero extra copies when D / FF are already 128-aligned and bf16).
    """
    D, FF = params["w1"].shape
    vmem_cap = _vmem_capacity_bytes()
    Dp = _round_up(D, 128)
    TF = _choose_tf(FF, Dp, vmem_cap)
    FFp = _round_up(FF, TF)

    def pad2(a, shape, dtype):
        a = a.astype(dtype)
        if a.shape == shape:
            return a
        return jnp.zeros(shape, dtype).at[: a.shape[0], : a.shape[1]].set(a)

    return {
        "w1": pad2(params["w1"], (Dp, FFp), compute_dtype),
        "b1": pad2(params["b1"].reshape(1, -1), (1, FFp), jnp.float32),
        "w2": pad2(params["w2"], (FFp, Dp), compute_dtype),
        "b2": pad2(params["b2"].reshape(1, -1), (1, Dp), jnp.float32),
        "D": D, "FF": FF, "Dp": Dp, "FFp": FFp, "TF": TF,
        "compute_dtype": compute_dtype, "vmem_cap": vmem_cap,
    }


def mlp_kernel(x_ref, w1_ref, b1_ref, w2_ref, b2_ref, o_ref, acc_ref, *, gelu_tanh):
    """Grid = (row_tiles, ff_tiles).  One step: rows tile i, hidden chunk j.

    x_ref  : (TM, Dp)  bf16
    w1_ref : (Dp, TF)  bf16    b1_ref : (1, TF) f32
    w2_ref : (TF, Dp)  bf16    b2_ref : (1, Dp) f32
    o_ref  : (TM, Dp)  out_dtype (same block across ff axis -> accumulator-resident)
    acc_ref: (TM, Dp)  f32 scratch
    """
    j = pl.program_id(1)

    @pl.when(j == 0)
    def _():
        acc_ref[...] = jnp.zeros_like(acc_ref)

    # First linear, this hidden chunk: (TM, Dp) @ (Dp, TF) -> f32 accumulate on MXU.
    h = jnp.dot(x_ref[...], w1_ref[...], preferred_element_type=jnp.float32)
    h = h + b1_ref[...]                    # single (1, TF) broadcast per step
    # tanh-approx GELU runs on the EUP (separate VLIW slot); exact erf optional.
    h = jax.nn.gelu(h, approximate=gelu_tanh)

    # Second linear contracts the hidden dim; sum chunk contributions across axis 1.
    acc_ref[...] += jnp.dot(h.astype(w2_ref.dtype), w2_ref[...],
                            preferred_element_type=jnp.float32)

    @pl.when(j == pl.num_programs(1) - 1)
    def _():
        o_ref[...] = (acc_ref[...] + b2_ref[...]).astype(o_ref.dtype)


def mlp_forward(x, params, *, out_dtype=jnp.bfloat16, gelu_tanh=True):
    """y = Linear2(GELU(Linear1(x))) with dropout as identity (eval mode).

    `params` may be raw ({"w1","b1","w2","b2"}) or, preferably, the output of
    prepare_mlp_params() so padding / bf16 casting happens once, not per call.
    Matmul operands are bf16, accumulation / bias / GELU are f32, output is
    `out_dtype` (bf16 by default to halve HBM write traffic).
    """
    if "Dp" not in params:
        params = prepare_mlp_params(params)

    D, FF = params["D"], params["FF"]
    Dp, FFp, TF = params["Dp"], params["FFp"], params["TF"]
    compute_dtype = params["compute_dtype"]
    vmem_cap = params["vmem_cap"]

    orig_shape = x.shape
    assert orig_shape[-1] == D, f"expected last dim {D}, got {orig_shape[-1]}"
    M = int(np.prod(orig_shape[:-1]))

    out_itemsize = jnp.dtype(out_dtype).itemsize
    TM = _choose_tm(M, TF, Dp, vmem_cap, out_itemsize)
    Mp = _round_up(M, TM)

    # Activations: cast always, pad only when needed (no-op for aligned shapes).
    x2 = x.reshape(M, D).astype(compute_dtype)
    if (Mp, Dp) != (M, D):
        xp = jnp.zeros((Mp, Dp), compute_dtype).at[:M, :D].set(x2)
    else:
        xp = x2

    w1p, b1p, w2p, b2p = params["w1"], params["b1"], params["w2"], params["b2"]
    grid = (Mp // TM, FFp // TF)

    # W1/W2 (and b1) are re-streamed from HBM once per row tile (index maps
    # depend only on j, which resets for every i).
    w_bytes = (w1p.size + w2p.size) * w1p.dtype.itemsize
    cost = pl.CostEstimate(
        flops=int(4 * Mp * Dp * FFp),
        transcendentals=int(Mp * FFp),
        bytes_accessed=int(
            xp.size * xp.dtype.itemsize
            + grid[0] * w_bytes
            + grid[0] * (b1p.size + b2p.size) * 4
            + Mp * Dp * out_itemsize
        ),
    )

    footprint = _pipeline_vmem_bytes(TM, TF, Dp, out_itemsize)
    vmem_limit = int(min(max(footprint + (16 << 20), 32 << 20), vmem_cap * 7 // 8))

    # NOTE: if profiling shows exposed weight DMA at row-tile boundaries, add
    # pipeline_mode=pl.Buffered(3) on the W1/W2 BlockSpecs (VMEM permitting).
    out = pl.pallas_call(
        functools.partial(mlp_kernel, gelu_tanh=gelu_tanh),
        out_shape=jax.ShapeDtypeStruct((Mp, Dp), out_dtype),
        grid_spec=pltpu.PrefetchScalarGridSpec(
            num_scalar_prefetch=0,
            grid=grid,
            in_specs=[
                pl.BlockSpec((TM, Dp), lambda i, j: (i, 0)),   # x rows (constant over j)
                pl.BlockSpec((Dp, TF), lambda i, j: (0, j)),   # W1 hidden chunk
                pl.BlockSpec((1, TF), lambda i, j: (0, j)),    # b1 hidden chunk
                pl.BlockSpec((TF, Dp), lambda i, j: (j, 0)),   # W2 hidden chunk
                pl.BlockSpec((1, Dp), lambda i, j: (0, 0)),    # b2
            ],
            out_specs=pl.BlockSpec((TM, Dp), lambda i, j: (i, 0)),
            scratch_shapes=[pltpu.VMEM((TM, Dp), jnp.float32)],
        ),
        compiler_params=pltpu.CompilerParams(
            dimension_semantics=("parallel", "arbitrary"),
            vmem_limit_bytes=vmem_limit,
        ),
        cost_estimate=cost,
    )(xp, w1p, b1p, w2p, b2p)

    if (Mp, Dp) != (M, D):
        out = out[:M, :D]
    return out.reshape(orig_shape)


def mlp_reference(x, params):
    """Pure-JAX f32 reference of the PyTorch MLP forward (dropout = identity,
    exact-erf GELU, as in torch nn.GELU())."""
    h = jnp.dot(x, params["w1"]) + params["b1"]
    h = jax.nn.gelu(h, approximate=False)
    return jnp.dot(h, params["w2"]) + params["b2"]


def make_params(key, n_embd, n_ff):
    """Mimic torch nn.Linear defaults (U(-1/sqrt(fan_in), 1/sqrt(fan_in))).
    Weights stored pre-transposed as (in_features, out_features)."""
    ks = jax.random.split(key, 4)

    def lin(k, fan_in, shape):
        bound = 1.0 / np.sqrt(fan_in)
        return jax.random.uniform(k, shape, jnp.float32, -bound, bound)

    return {
        "w1": lin(ks[0], n_embd, (n_embd, n_ff)),
        "b1": lin(ks[1], n_embd, (n_ff,)),
        "w2": lin(ks[2], n_ff, (n_ff, n_embd)),
        "b2": lin(ks[3], n_ff, (n_embd,)),
    }


if __name__ == "__main__":
    B, S, D, FF = 2, 8, 32, 64          # batch, seq, n_embd, n_ff
    key = jax.random.PRNGKey(0)
    kx, kp = jax.random.split(key)
    x = jax.random.normal(kx, (B, S, D), jnp.float32)
    params = make_params(kp, D, FF)

    prepared = prepare_mlp_params(params)       # one-time pad/cast (hoisted)
    out = mlp_forward(x, prepared)
    out = jax.block_until_ready(out)

    assert out.shape == (B, S, D)
    out_f32 = out.astype(jnp.float32)
    assert bool(jnp.all(jnp.isfinite(out_f32)))

    ref = mlp_reference(x, params)
    max_err = float(jnp.max(jnp.abs(out_f32 - ref)))
    assert max_err < 5e-2, f"mismatch vs reference: max abs err {max_err}"

    print("KERNEL_OK")
</pallas_src>

<mosaic_0001>
module attributes {stable_mosaic.version = 11 : i64} {
  func.func @mlp_kernel(%arg0: i32, %arg1: i32, %arg2: memref<16x128xbf16, #tpu.memory_space<vmem>>, %arg3: memref<128x128xbf16, #tpu.memory_space<vmem>>, %arg4: memref<1x128xf32, #tpu.memory_space<vmem>>, %arg5: memref<128x128xbf16, #tpu.memory_space<vmem>>, %arg6: memref<1x128xf32, #tpu.memory_space<vmem>>, %arg7: memref<16x128xbf16, #tpu.memory_space<vmem>>, %arg8: memref<16x128xf32, #tpu.memory_space<vmem>>) attributes {dimension_semantics = [#tpu.dimension_semantics<parallel>, #tpu.dimension_semantics<arbitrary>], iteration_bounds = array<i64: 1, 1>, scalar_prefetch = 0 : i64, scratch_operands = 1 : i64, tpu.core_type = #tpu.core_type<tc>, window_params = [{transform_indices = @transform_0, window_bounds = array<i64: 16, 128>}, {transform_indices = @transform_1, window_bounds = array<i64: 128, 128>}, {transform_indices = @transform_2, window_bounds = array<i64: 1, 128>}, {transform_indices = @transform_3, window_bounds = array<i64: 128, 128>}, {pipeline_mode = #tpu.pipeline_mode<synchronous>, transform_indices = @transform_4, window_bounds = array<i64: 1, 128>}, {transform_indices = @transform_5, window_bounds = array<i64: 16, 128>}]} {
    %c0_i32 = arith.constant 0 : i32
    %0 = arith.cmpi eq, %arg1, %c0_i32 : i32
    %1 = arith.extui %0 : i1 to i32
    %c0_i32_0 = arith.constant 0 : i32
    %2 = arith.cmpi ne, %1, %c0_i32_0 : i32
    scf.if %2 {
      %cst_19 = arith.constant 0.000000e+00 : f32
      %31 = vector.broadcast %cst_19 : f32 to vector<16x128xf32>
      %c0_20 = arith.constant 0 : index
      %c0_21 = arith.constant 0 : index
      %32 = vector.load %arg8[%c0_20, %c0_21] : memref<16x128xf32, #tpu.memory_space<vmem>>, vector<16x128xf32>
      tpu.vector_store %arg8[%c0_20, %c0_21], %31 {strides = array<i32>} : memref<16x128xf32, #tpu.memory_space<vmem>>, vector<16x128xf32>,
    } else {
    }
    %c0 = arith.constant 0 : index
    %c0_1 = arith.constant 0 : index
    %3 = vector.load %arg2[%c0, %c0_1] : memref<16x128xbf16, #tpu.memory_space<vmem>>, vector<16x128xbf16>
    %c0_2 = arith.constant 0 : index
    %c0_3 = arith.constant 0 : index
    %4 = vector.load %arg3[%c0_2, %c0_3] : memref<128x128xbf16, #tpu.memory_space<vmem>>, vector<128x128xbf16>
    %cst = arith.constant dense<0.000000e+00> : vector<16x128xf32>
    %5 = tpu.matmul %3, %4, %cst {dimension_numbers = #tpu.dot_dimension_numbers<[1], [0], [0], [1], [0, 0, 1, 1], [], []>} : vector<16x128xbf16>, vector<128x128xbf16>, vector<16x128xf32> -> vector<16x128xf32>
    %c0_4 = arith.constant 0 : index
    %c0_5 = arith.constant 0 : index
    %6 = vector.load %arg4[%c0_4, %c0_5] : memref<1x128xf32, #tpu.memory_space<vmem>>, vector<1x128xf32>
    %7 = vector.broadcast %6 : vector<1x128xf32> to vector<16x128xf32>
    %8 = arith.addf %5, %7 : vector<16x128xf32>
    %9 = arith.mulf %8, %8 : vector<16x128xf32>
    %10 = arith.mulf %8, %9 : vector<16x128xf32>
    %cst_6 = arith.constant 4.471500e-02 : f32
    %11 = vector.broadcast %cst_6 : f32 to vector<16x128xf32>
    %12 = arith.mulf %11, %10 : vector<16x128xf32>
    %13 = arith.addf %8, %12 : vector<16x128xf32>
    %cst_7 = arith.constant 0.797884583 : f32
    %14 = vector.broadcast %cst_7 : f32 to vector<16x128xf32>
    %15 = arith.mulf %14, %13 : vector<16x128xf32>
    %16 = math.tanh %15 : vector<16x128xf32>
    %cst_8 = arith.constant 1.000000e+00 : f32
    %17 = vector.broadcast %cst_8 : f32 to vector<16x128xf32>
    %18 = arith.addf %17, %16 : vector<16x128xf32>
    %cst_9 = arith.constant 5.000000e-01 : f32
    %19 = vector.broadcast %cst_9 : f32 to vector<16x128xf32>
    %20 = arith.mulf %19, %18 : vector<16x128xf32>
    %21 = arith.mulf %8, %20 : vector<16x128xf32>
    %c0_10 = arith.constant 0 : index
    %c0_11 = arith.constant 0 : index
    %22 = vector.load %arg8[%c0_10, %c0_11] : memref<16x128xf32, #tpu.memory_space<vmem>>, vector<16x128xf32>
    %23 = arith.truncf %21 : vector<16x128xf32> to vector<16x128xbf16>
    %c0_12 = arith.constant 0 : index
    %c0_13 = arith.constant 0 : index
    %24 = vector.load %arg5[%c0_12, %c0_13] : memref<128x128xbf16, #tpu.memory_space<vmem>>, vector<128x128xbf16>
    %cst_14 = arith.constant dense<0.000000e+00> : vector<16x128xf32>
    %25 = tpu.matmul %23, %24, %cst_14 {dimension_numbers = #tpu.dot_dimension_numbers<[1], [0], [0], [1], [0, 0, 1, 1], [], []>} : vector<16x128xbf16>, vector<128x128xbf16>, vector<16x128xf32> -> vector<16x128xf32>
    %26 = arith.addf %22, %25 : vector<16x128xf32>
    %c0_15 = arith.constant 0 : index
    %c0_16 = arith.constant 0 : index
    %27 = vector.load %arg8[%c0_15, %c0_16] : memref<16x128xf32, #tpu.memory_space<vmem>>, vector<16x128xf32>
    tpu.vector_store %arg8[%c0_15, %c0_16], %26 {strides = array<i32>} : memref<16x128xf32, #tpu.memory_space<vmem>>, vector<16x128xf32>,
    %c0_i32_17 = arith.constant 0 : i32
    %28 = arith.cmpi eq, %arg1, %c0_i32_17 : i32
    %29 = arith.extui %28 : i1 to i32
    %c0_i32_18 = arith.constant 0 : i32
    %30 = arith.cmpi ne, %29, %c0_i32_18 : i32
    scf.if %30 {
      %c0_19 = arith.constant 0 : index
      %c0_20 = arith.constant 0 : index
      %31 = vector.load %arg8[%c0_19, %c0_20] : memref<16x128xf32, #tpu.memory_space<vmem>>, vector<16x128xf32>
      %c0_21 = arith.constant 0 : index
      %c0_22 = arith.constant 0 : index
      %32 = vector.load %arg6[%c0_21, %c0_22] : memref<1x128xf32, #tpu.memory_space<vmem>>, vector<1x128xf32>
      %33 = vector.broadcast %32 : vector<1x128xf32> to vector<16x128xf32>
      %34 = arith.addf %31, %33 : vector<16x128xf32>
      %35 = arith.truncf %34 : vector<16x128xf32> to vector<16x128xbf16>
      %c0_23 = arith.constant 0 : index
      %c0_24 = arith.constant 0 : index
      %36 = vector.load %arg7[%c0_23, %c0_24] : memref<16x128xbf16, #tpu.memory_space<vmem>>, vector<16x128xbf16>
      tpu.vector_store %arg7[%c0_23, %c0_24], %35 {strides = array<i32>} : memref<16x128xbf16, #tpu.memory_space<vmem>>, vector<16x128xbf16>,
    } else {
    }
    return
  }
  func.func @transform_0(%arg0: i32, %arg1: i32) -> (i32, i32) {
    %c0_i32 = arith.constant 0 : i32
    %c0_i32_0 = arith.constant 0 : i32
    return %arg0, %c0_i32 : i32, i32
  }
  func.func @transform_1(%arg0: i32, %arg1: i32) -> (i32, i32) {
    %c0_i32 = arith.constant 0 : i32
    %c0_i32_0 = arith.constant 0 : i32
    return %c0_i32, %arg1 : i32, i32
  }
  func.func @transform_2(%arg0: i32, %arg1: i32) -> (i32, i32) {
    %c0_i32 = arith.constant 0 : i32
    %c0_i32_0 = arith.constant 0 : i32
    return %c0_i32, %arg1 : i32, i32
  }
  func.func @transform_3(%arg0: i32, %arg1: i32) -> (i32, i32) {
    %c0_i32 = arith.constant 0 : i32
    %c0_i32_0 = arith.constant 0 : i32
    return %arg1, %c0_i32 : i32, i32
  }
  func.func @transform_4(%arg0: i32, %arg1: i32) -> (i32, i32) {
    %c0_i32 = arith.constant 0 : i32
    %c0_i32_0 = arith.constant 0 : i32
    %c0_i32_1 = arith.constant 0 : i32
    return %c0_i32, %c0_i32_0 : i32, i32
  }
  func.func @transform_5(%arg0: i32, %arg1: i32) -> (i32, i32) {
    %c0_i32 = arith.constant 0 : i32
    %c0_i32_0 = arith.constant 0 : i32
    return %arg0, %c0_i32 : i32, i32
  }
}

</mosaic_0001>

<bundles_post_ra>
// kernel: tpu_custom_call.1
= control target key start
LH: loop header
LB: loop body
LE: loop exit
PB: predicated region body
PF: predicated region fallthrough
CT: control target
= control target key end

     0   :  { %10 = vsyncpa [#allocation4], 0  ;;  %s630_s0 = inlined_call_operand.hbm [shape: bf16[16,128], index: 0, kind: input, shape index: {}]   ;;  %s631_s1 = inlined_call_operand.hbm [shape: bf16[128,128], index: 1, kind: input, shape index: {}]   ;;  %s632_s2 = inlined_call_operand.vmem [shape: f32[1,128], index: 2, kind: input, shape index: {}]   ;;  %s633_s3 = inlined_call_operand.hbm [shape: bf16[128,128], index: 3, kind: input, shape index: {}]   ;;  %s634_s4 = inlined_call_operand.vmem [shape: f32[1,128], index: 4, kind: input, shape index: {}]   ;;  %s635_s5 = inlined_call_operand.hbm [shape: bf16[16,128], index: 5, kind: output, shape index: {}]  }
   0x1   :  { %11 = vsyncpa [#allocation7], 0 }
   0x2   :  { %12 = vsyncpa [#allocation5], 0  ;;  %s562_s18 = smov [#allocation6]   ;;  %s563_s20 = smov [#allocation3]  }
   0x3   :  { %s30_s19 = sshll.u32 %s562_s18, 4  ;;  %s18_s21 = sshll.u32 %s563_s20, 4  ;;  %s31_s19 = int_to_ptr.vmem [resolvable:$true] %s30_s19  ;;  %s19_s21 = int_to_ptr.vmem [resolvable:$true] %s18_s21 }
   0x4   :  { %s484_s22 = scalar_lea.vmem %s31_s19, 1024  ;;  %p489_p1 = scmp.lt.s32.totalorder %s31_s19, %s31_s19 }
   0x5   :  { %p485_p0 = scmp.ne.s32.totalorder %s31_s19, %s484_s22  ;;  %p490_p2 = scmp.lt.s32.totalorder %s484_s22, %s484_s22 }
   0x7   :  { %p491_p3 = por %p490_p2, %p489_p1 }
   0x9   :  { %p492_p4 = pnand %p491_p3, %p485_p0 }
   0xb   :  { %495 = shalt.err (!%p492_p4)
}
   0xc   :  { %s564_s23 = smov 64   ;;  %s565_s24 = smov 4  }
   0xd   :  { %36 = dma.hbm_to_vmem [thread:$0]  %s631_s1, 1024, %s31_s19, [#allocation7], %s564_s23, %s564_s23, %s565_s24  }
   0xe   :  { %s504_s27 = scalar_lea.vmem %s19_s21, 128  ;;  %p509_p6 = scmp.lt.s32.totalorder %s19_s21, %s19_s21 }
   0xf   :  { %p505_p5 = scmp.ne.s32.totalorder %s19_s21, %s504_s27  ;;  %p510_p7 = scmp.lt.s32.totalorder %s504_s27, %s504_s27 }
  0x11   :  { %p511_p8 = por %p510_p7, %p509_p6 }
  0x13   :  { %p512_p9 = pnand %p511_p8, %p505_p5 }
  0x15   :  { %515 = shalt.err (!%p512_p9)
}
  0x16   :  { %24 = dma.hbm_to_vmem [thread:$0]  %s630_s0, 128, %s19_s21, [#allocation4], %s564_s23, %s564_s23, %s565_s24  }
  0x17   :  { %s566_s30 = smov [#allocation8]  }
  0x18   :  { %s44_s6 = sshll.u32 %s566_s30, 4  ;;  %s45_s6 = int_to_ptr.vmem [resolvable:$true] %s44_s6 }
  0x19   :  { %s524_s7 = scalar_lea.vmem %s45_s6, 1024  ;;  %p529_p11 = scmp.lt.s32.totalorder %s45_s6, %s45_s6 }
  0x1a   :  { %p525_p10 = scmp.ne.s32.totalorder %s45_s6, %s524_s7  ;;  %p530_p12 = scmp.lt.s32.totalorder %s524_s7, %s524_s7 }
  0x1c   :  { %p531_p13 = por %p530_p12, %p529_p11 }
  0x1e   :  { %p532_p0 = pnand %p531_p13, %p525_p10 }
  0x20   :  { %535 = shalt.err (!%p532_p0)
}
  0x21   :  { %50 = dma.hbm_to_vmem [thread:$0]  %s633_s3, 1024, %s45_s6, [#allocation7], %s564_s23, %s564_s23, %s565_s24  }
  0x22   :  { %556 = dma.done.wait [#allocation4], 128  }
  0x23   :  { %557 = vsyncadd [#allocation4], 4294967168 }
  0x24   :  { %558 = dma.done.wait [#allocation7], 2048  }
  0x25   :  { %559 = vsyncadd [#allocation7], 4294965248  ;;  %v567_v0 = vmov 0.0   ;;  %vm568_vm0 = vmmov 0   ;;  %v455_v1 = vld [vmem:[#allocation6 + $0x38] sm:$0xff]   ;;  %v456_v2 = vld [vmem:[#allocation6 + $0x30] sm:$0xff]  }
  0x26   :  { %407 = vmatprep.subr.bf16.mxu0 %v567_v0  ;;  %423 = vmatprep.mubr.msk.bf16.mxu0 %vm568_vm0, %v567_v0  ;;  %v457_v3 = vld [vmem:[#allocation6 + $0x28] sm:$0xff]   ;;  %v458_v4 = vld [vmem:[#allocation6 + $0x20] sm:$0xff]   ;;  %v459_v5 = vld [vmem:[#allocation6 + $0x18] sm:$0xff]   ;;  %s569_s10 = smov [#allocation9]  }
  0x27   :  { %427 = vmatprep.subr.bf16.mxu1 %v567_v0  ;;  %443 = vmatprep.mubr.msk.bf16.mxu1 %vm568_vm0, %v567_v0  ;;  %v460_v6 = vld [vmem:[#allocation6 + $0x10] sm:$0xff]   ;;  %v461_v7 = vld [vmem:[#allocation6 + $0x8] sm:$0xff]   ;;  %v462_v8 = vld [vmem:[#allocation6] sm:$0xff]   ;;  %s348_s11 = sshll.u32 %s569_s10, 4  ;;  %s349_s11 = int_to_ptr.vmem [resolvable:$true] %s348_s11 }
  0x28   :  { %408 = vmatpush3.bf16.msra.mxu0 %v455_v1  ;;  %v463_v9 = vld [vmem:[#allocation3] sm:$0xff]   ;;  %v465_v11 = vld [vmem:[#allocation8 + $0x30] sm:$0xff]   ;;  %v466_v12 = vld [vmem:[#allocation8 + $0x28] sm:$0xff]   ;;  %s536_s12 = scalar_lea.vmem %s349_s11, 128  ;;  %p541_p2 = scmp.lt.s32.totalorder %s349_s11, %s349_s11 }
  0x29   :  { %409 = vmatprep.subr.bf16.mxu0 %v567_v0  ;;  %v464_v10 = vld [vmem:[#allocation8 + $0x38] sm:$0xff]   ;;  %v467_v13 = vld [vmem:[#allocation8 + $0x20] sm:$0xff]   ;;  %v469_v15 = vld [vmem:[#allocation8 + $0x10] sm:$0xff]   ;;  %p537_p1 = scmp.ne.s32.totalorder %s349_s11, %s536_s12  ;;  %p542_p3 = scmp.lt.s32.totalorder %s536_s12, %s536_s12 }
  0x2a   :  { %428 = vmatpush3.bf16.msra.mxu1 %v464_v10  ;;  %v468_v14 = vld [vmem:[#allocation8 + $0x18] sm:$0xff]   ;;  %v470_v16 = vld [vmem:[#allocation8 + $0x8] sm:$0xff]   ;;  %v471_v17 = vld [vmem:[#allocation8] sm:$0xff]  }
  0x2b   :  { %429 = vmatprep.subr.bf16.mxu1 %v567_v0  ;;  %v361_v18 = vld [vmem:[%s632_s2] ss:$0 sm:$0xff]  ;;  %p543_p4 = por %p542_p3, %p541_p2 }
  0x2c   :  { %410 = vmatpush3.bf16.msra.mxu0 %v456_v2  ;;  %v379_v45 = vld [vmem:[%s634_s4] ss:$0 sm:$0xff] }
  0x2d   :  { %411 = vmatprep.subr.bf16.mxu0 %v567_v0  ;;  %p544_p5 = pnand %p543_p4, %p537_p1 }
  0x2e   :  { %430 = vmatpush3.bf16.msra.mxu1 %v465_v11 }
  0x2f   :  { %431 = vmatprep.subr.bf16.mxu1 %v567_v0 }
  0x30   :  { %412 = vmatpush3.bf16.msra.mxu0 %v457_v3 }
  0x31   :  { %413 = vmatprep.subr.bf16.mxu0 %v567_v0 }
  0x32   :  { %432 = vmatpush3.bf16.msra.mxu1 %v466_v12 }
  0x33   :  { %433 = vmatprep.subr.bf16.mxu1 %v567_v0 }
  0x34   :  { %414 = vmatpush3.bf16.msra.mxu0 %v458_v4 }
  0x35   :  { %415 = vmatprep.subr.bf16.mxu0 %v567_v0 }
  0x36   :  { %434 = vmatpush3.bf16.msra.mxu1 %v467_v13 }
  0x37   :  { %435 = vmatprep.subr.bf16.mxu1 %v567_v0 }
  0x38   :  { %416 = vmatpush3.bf16.msra.mxu0 %v459_v5 }
  0x39   :  { %417 = vmatprep.subr.bf16.mxu0 %v567_v0 }
  0x3a   :  { %436 = vmatpush3.bf16.msra.mxu1 %v468_v14 }
  0x3b   :  { %437 = vmatprep.subr.bf16.mxu1 %v567_v0 }
  0x3c   :  { %418 = vmatpush3.bf16.msra.mxu0 %v460_v6 }
  0x3d   :  { %419 = vmatprep.subr.bf16.mxu0 %v567_v0 }
  0x3e   :  { %438 = vmatpush3.bf16.msra.mxu1 %v469_v15 }
  0x3f   :  { %439 = vmatprep.subr.bf16.mxu1 %v567_v0 }
  0x40   :  { %420 = vmatpush3.bf16.msra.mxu0 %v461_v7 }
  0x41   :  { %421 = vmatprep.subr.bf16.mxu0 %v567_v0 }
  0x42   :  { %440 = vmatpush3.bf16.msra.mxu1 %v470_v16 }
  0x43   :  { %441 = vmatprep.subr.bf16.mxu1 %v567_v0 }
  0x44   :  { %422 = vmatpush3.bf16.msra.mxu0 %v462_v8 }
  0x46   :  { %442 = vmatpush3.bf16.msra.mxu1 %v471_v17 }
  0x47   :  { %424 = vmatmul.mubr.bf16.vlgmr.msra.gmra.mxu0 %v463_v9 }
 0x107   :  { %v182_v19 = vpop.f32.mrf.mxu0 }
 0x108   :  { %v183_v20 = vadd.f32 %v361_v18, %v182_v19 }
 0x109   :  { %v425_v21 = vpop.f32.mrf.mxu0 }
 0x10a   :  { %v189_v22 = vmul.f32 %v183_v20, %v183_v20 }
 0x10b   :  { %v185_v23 = vpop.f32.mrf.mxu0 }
 0x10c   :  { %v191_v24 = vmul.f32 %v189_v22, %v183_v20  ;;  %v186_v25 = vadd.f32 %v361_v18, %v185_v23 }
 0x10d   :  { %v426_v26 = vpop.f32.mrf.mxu0 }
 0x10e   :  { %v193_v27 = vmul.f32 0.044715, %v191_v24  ;;  %v190_v28 = vmul.f32 %v186_v25, %v186_v25 }
 0x110   :  { %v195_v29 = vadd.f32 %v193_v27, %v183_v20  ;;  %v192_v30 = vmul.f32 %v190_v28, %v186_v25 }
 0x112   :  { %v197_v31 = vmul.f32 0.7978846, %v195_v29  ;;  %v194_v32 = vmul.f32 0.044715, %v192_v30 }
 0x114   :  { %472 = vtanh.f32 %v197_v31  ;;  %v196_v33 = vadd.f32 %v194_v32, %v186_v25 }
 0x116   :  { %v198_v34 = vmul.f32 0.7978846, %v196_v33 }
 0x118   :  { %474 = vtanh.f32 %v198_v34 }
 0x121   :  { %v473_v35 = vpop.eup %472 }
 0x122   :  { %v201_v36 = vadd.f32 1.0, %v473_v35 }
 0x124   :  { %v203_v39 = vmul.f32 0.5, %v201_v36 }
 0x125   :  { %v475_v37 = vpop.eup %474 }
 0x126   :  { %v202_v38 = vadd.f32 1.0, %v475_v37  ;;  %v205_v41 = vmul.f32 %v203_v39, %v183_v20 }
 0x128   :  { %v204_v40 = vmul.f32 0.5, %v202_v38 }
 0x12a   :  { %v206_v42 = vmul.f32 %v204_v40, %v186_v25 }
 0x12c   :  { %v209_v43 = vpack.c.bf16 %v206_v42, %v205_v41 }
 0x12e   :  { %444 = vmatmul.mubr.bf16.vlgmr.msra.gmra.mxu1 %v209_v43 }
 0x1ee   :  { %v308_v44 = vpop.f32.mrf.mxu1 }
 0x1ef   :  { %v331_v48 = vadd.f32 %v379_v45, %v308_v44 }
 0x1f0   :  { %v445_v46 = vpop.f32.mrf.mxu1 }
 0x1f2   :  { %v311_v47 = vpop.f32.mrf.mxu1 }
 0x1f3   :  { %v332_v49 = vadd.f32 %v379_v45, %v311_v47 }
 0x1f4   :  { %v446_v50 = vpop.f32.mrf.mxu1 }
 0x1f5   :  { %v387_v51 = vpack.c.bf16 %v332_v49, %v331_v48 }
 0x1f7   :  { %388 = vst [vmem:[#allocation9] sm:$0xff] %v387_v51  }
 0x1f8   :  { %547 = shalt.err (!%p544_p5)
}
 0x1f9   :  { %354 = dma.vmem_to_hbm [thread:$0]  %s349_s11, 128, %s635_s5, [#allocation5], %s564_s23, %s564_s23, %s565_s24  }
 0x1fa   :  { %560 = dma.done.wait [#allocation5], 128  }
 0x1fb   :  { %561 = vsyncadd [#allocation5], 4294967168 }
 0x1fc   :  { %358 = vsyncpa [#allocation4], 1 }
 0x1fd   :  { %359 = vsyncpa [#allocation7], 1 }
 0x1fe   :  { %360 = vsyncpa [#allocation5], 1 }

</bundles_post_ra>
